<compile_context>
chip_gen: v6e
topology: v6e:2x2x1
jax: 0.10.0
libtpu: 0.0.40
codegen_flags: <defaults>
</compile_context>

<pallas_src>
import math
import functools

import jax
import jax.numpy as jnp
from jax.experimental import pallas as pl
from jax.experimental.pallas import tpu as pltpu


_ROW_TILE_CAP = 512                    # rows per grid step for row-tiled kernels
_SEQ_TILE_CAP = 512                    # q / kv tiles for flash attention
_VMEM_LIMIT = 40 * 1024 * 1024         # explicit scoped-VMEM cap (fits v7x 64 MiB)


def _row_tile(m, cap=_ROW_TILE_CAP):
    """Row tile for [M, *] kernels: never below 128; ragged last block is fine."""
    if m <= cap:
        return m
    for t in (cap, 256, 128):
        if m % t == 0:
            return t
    return cap                          # ragged last block handled by Pallas masking


def _seq_tile(s, cap=_SEQ_TILE_CAP):
    """Sequence tile for flash attention; must divide S exactly (softmax reduction)."""
    if s <= cap:
        return s
    for t in (cap, 256, 128):
        if s % t == 0:
            return t
    return s                            # fall back to untiled for odd lengths


def _cp(semantics=("parallel",)):
    return pltpu.CompilerParams(dimension_semantics=semantics,
                                vmem_limit_bytes=_VMEM_LIMIT)


def _probe_copy_kernel(x_ref, o_ref):
    o_ref[...] = x_ref[...]


@functools.lru_cache(maxsize=None)
def _buffered_ok():
    """Probe whether pipeline_mode=pl.Buffered(1) is supported on this jax/libtpu."""
    if not hasattr(pl, "Buffered"):
        return False
    try:
        x = jnp.zeros((8, 128), jnp.float32)
        out = pl.pallas_call(
            _probe_copy_kernel,
            out_shape=jax.ShapeDtypeStruct((8, 128), jnp.float32),
            grid=(1,),
            in_specs=[pl.BlockSpec((8, 128), lambda i: (0, 0),
                                   pipeline_mode=pl.Buffered(1))],
            out_specs=pl.BlockSpec((8, 128), lambda i: (0, 0)),
        )(x)
        jax.block_until_ready(out)
        return True
    except Exception:
        return False


def _stationary(shape):
    """BlockSpec for grid-invariant operands: single-buffered (halves VMEM footprint)."""
    ndim = len(shape)
    imap = lambda *args: (0,) * ndim
    if _buffered_ok():
        return pl.BlockSpec(shape, imap, pipeline_mode=pl.Buffered(1))
    return pl.BlockSpec(shape, imap)


# ----------------------------- Pallas kernels -------------------------------

def _layernorm(y, g, b):
    mu = jnp.mean(y, axis=-1, keepdims=True)
    var = jnp.mean(jnp.square(y - mu), axis=-1, keepdims=True)
    return (y - mu) * jax.lax.rsqrt(var + 1e-5) * g + b


def _linear_kernel(x_ref, w_ref, b_ref, o_ref):
    x = x_ref[...].astype(jnp.bfloat16)
    acc = jnp.dot(x, w_ref[...], preferred_element_type=jnp.float32) + b_ref[...]
    o_ref[...] = acc.astype(o_ref.dtype)


def linear_pallas(x, w, b, out_dtype=jnp.float32):
    # x: [M, K], w: [K, N] bf16, b: [N] f32 -> [M, N] out_dtype
    M, K = x.shape
    N = w.shape[1]
    tm = _row_tile(M)
    return pl.pallas_call(
        _linear_kernel,
        out_shape=jax.ShapeDtypeStruct((M, N), out_dtype),
        grid=(pl.cdiv(M, tm),),
        in_specs=[pl.BlockSpec((tm, K), lambda i: (i, 0)),
                  _stationary((K, N)),
                  _stationary((1, N))],
        out_specs=pl.BlockSpec((tm, N), lambda i: (i, 0)),
        compiler_params=_cp(),
    )(x, w.astype(jnp.bfloat16), b.astype(jnp.float32).reshape(1, N))


def _proj_res_ln_kernel(ctx_ref, w_ref, b_ref, res_ref, g_ref, be_ref, o_ref):
    # LayerNorm(res + ctx @ Wo + bo) -- fused attention epilogue
    ctx = ctx_ref[...].astype(jnp.bfloat16)
    proj = jnp.dot(ctx, w_ref[...], preferred_element_type=jnp.float32) + b_ref[...]
    o_ref[...] = _layernorm(res_ref[...] + proj, g_ref[...], be_ref[...])


def proj_res_ln_pallas(ctx, wo, bo, res, gamma, beta):
    M, D = res.shape
    tm = _row_tile(M)
    return pl.pallas_call(
        _proj_res_ln_kernel,
        out_shape=jax.ShapeDtypeStruct((M, D), jnp.float32),
        grid=(pl.cdiv(M, tm),),
        in_specs=[pl.BlockSpec((tm, D), lambda i: (i, 0)),
                  _stationary((D, D)),
                  _stationary((1, D)),
                  pl.BlockSpec((tm, D), lambda i: (i, 0)),
                  _stationary((1, D)),
                  _stationary((1, D))],
        out_specs=pl.BlockSpec((tm, D), lambda i: (i, 0)),
        compiler_params=_cp(),
    )(ctx, wo, bo.reshape(1, D), res, gamma.reshape(1, D), beta.reshape(1, D))


def _ffn_res_ln_kernel(x_ref, w1_ref, b1_ref, w2_ref, b2_ref, g_ref, be_ref,
                       *rest, extra_ln):
    # LayerNorm(x + relu(x @ W1 + b1) @ W2 + b2), optionally followed by a second
    # LayerNorm (the encoder's final norm fused into the last encoder layer).
    if extra_ln:
        g2_ref, be2_ref, o_ref = rest
    else:
        (o_ref,) = rest
    x = x_ref[...]
    h = jnp.dot(x.astype(jnp.bfloat16), w1_ref[...],
                preferred_element_type=jnp.float32) + b1_ref[...]
    h = jnp.maximum(h, 0.0)
    y = x + jnp.dot(h.astype(jnp.bfloat16), w2_ref[...],
                    preferred_element_type=jnp.float32) + b2_ref[...]
    y = _layernorm(y, g_ref[...], be_ref[...])
    if extra_ln:
        y = _layernorm(y, g2_ref[...], be2_ref[...])
    o_ref[...] = y


def ffn_res_ln_pallas(x, w1, b1, w2, b2, gamma, beta, gamma2=None, beta2=None):
    M, D = x.shape
    F = w1.shape[1]
    tm = _row_tile(M)
    extra = gamma2 is not None
    in_specs = [pl.BlockSpec((tm, D), lambda i: (i, 0)),
                _stationary((D, F)), _stationary((1, F)),
                _stationary((F, D)), _stationary((1, D)),
                _stationary((1, D)), _stationary((1, D))]
    operands = [x, w1, b1.reshape(1, F), w2, b2.reshape(1, D),
                gamma.reshape(1, D), beta.reshape(1, D)]
    if extra:
        in_specs += [_stationary((1, D)), _stationary((1, D))]
        operands += [gamma2.reshape(1, D), beta2.reshape(1, D)]
    return pl.pallas_call(
        functools.partial(_ffn_res_ln_kernel, extra_ln=extra),
        out_shape=jax.ShapeDtypeStruct((M, D), jnp.float32),
        grid=(pl.cdiv(M, tm),),
        in_specs=in_specs,
        out_specs=pl.BlockSpec((tm, D), lambda i: (i, 0)),
        compiler_params=_cp(),
    )(*operands)


def _ln_linear_kernel(x_ref, g_ref, be_ref, w_ref, b_ref, o_ref):
    # (decoder final LayerNorm) fused as a prologue of the fused output-heads matmul
    y = _layernorm(x_ref[...], g_ref[...], be_ref[...])
    o_ref[...] = jnp.dot(y.astype(jnp.bfloat16), w_ref[...],
                         preferred_element_type=jnp.float32) + b_ref[...]


def ln_linear_pallas(x, gamma, beta, w, b):
    M, D = x.shape
    N = w.shape[1]
    tm = _row_tile(M)
    return pl.pallas_call(
        _ln_linear_kernel,
        out_shape=jax.ShapeDtypeStruct((M, N), jnp.float32),
        grid=(pl.cdiv(M, tm),),
        in_specs=[pl.BlockSpec((tm, D), lambda i: (i, 0)),
                  _stationary((1, D)), _stationary((1, D)),
                  _stationary((D, N)), _stationary((1, N))],
        out_specs=pl.BlockSpec((tm, N), lambda i: (i, 0)),
        compiler_params=_cp(),
    )(x, gamma.reshape(1, D), beta.reshape(1, D), w, b.reshape(1, N))


def _ln_kernel(x_ref, g_ref, b_ref, o_ref):
    o_ref[...] = _layernorm(x_ref[...], g_ref[...], b_ref[...])


def layernorm_pallas(x, gamma, beta):
    # Only used in degenerate configs (0 encoder layers); normally fused elsewhere.
    M, D = x.shape
    tm = _row_tile(M)
    return pl.pallas_call(
        _ln_kernel,
        out_shape=jax.ShapeDtypeStruct((M, D), jnp.float32),
        grid=(pl.cdiv(M, tm),),
        in_specs=[pl.BlockSpec((tm, D), lambda i: (i, 0)),
                  _stationary((1, D)), _stationary((1, D))],
        out_specs=pl.BlockSpec((tm, D), lambda i: (i, 0)),
        compiler_params=_cp(),
    )(x, gamma.reshape(1, D), beta.reshape(1, D))


def _flash_attn_kernel(q_ref, k_ref, v_ref, *rest, causal, has_mask, tq, tk):
    # Online-softmax attention. Grid = (B*H, nq, nk); kv tiles are the reduction
    # axis. 1/sqrt(Dh) is baked into Wq; 1/denominator applied to the output.
    if has_mask:
        mask_ref, o_ref, m_sc, l_sc, acc_sc = rest
    else:
        o_ref, m_sc, l_sc, acc_sc = rest

    ki = pl.program_id(2)

    @pl.when(ki == 0)
    def _():
        m_sc[...] = jnp.full_like(m_sc, -1e30)
        l_sc[...] = jnp.zeros_like(l_sc)
        acc_sc[...] = jnp.zeros_like(acc_sc)

    # q: [tq, Dh] bf16, kT: [Dh, tk] bf16 (pre-transposed, no in-kernel relayout)
    s = jnp.dot(q_ref[0], k_ref[0], preferred_element_type=jnp.float32)   # [tq, tk]
    if has_mask:
        s = s + mask_ref[0, 0]
    if causal:
        qi = pl.program_id(1)
        row = qi * tq + jax.lax.broadcasted_iota(jnp.int32, (tq, tk), 0)
        col = ki * tk + jax.lax.broadcasted_iota(jnp.int32, (tq, tk), 1)
        s = jnp.where(col <= row, s, -1e30)

    m_prev = m_sc[...]
    m_new = jnp.maximum(m_prev, jnp.max(s, axis=-1, keepdims=True))
    alpha = jnp.exp(m_prev - m_new)
    p = jnp.exp(s - m_new)
    l_sc[...] = alpha * l_sc[...] + jnp.sum(p, axis=-1, keepdims=True)
    acc_sc[...] = alpha * acc_sc[...] + jnp.dot(
        p.astype(jnp.bfloat16), v_ref[0], preferred_element_type=jnp.float32)
    m_sc[...] = m_new

    @pl.when(ki == pl.num_programs(2) - 1)
    def _():
        o_ref[0] = (acc_sc[...] * pl.reciprocal(l_sc[...], approx=True)
                    ).astype(o_ref.dtype)


def attention_pallas(q, kt, v, *, causal=False, mask=None, num_heads=1):
    # q: [BH, Sq, Dh] bf16, kt: [BH, Dh, Sk] bf16, v: [BH, Sk, Dh] bf16
    # mask: None, or additive f32 [Bm, 1, Sq, Sk] (Bm in {1, B}); causal -> iota in-kernel.
    BH, Sq, Dh = q.shape
    Sk = v.shape[1]
    tq = _seq_tile(Sq)
    tk = _seq_tile(Sk)
    grid = (BH, pl.cdiv(Sq, tq), pl.cdiv(Sk, tk))

    in_specs = [pl.BlockSpec((1, tq, Dh), lambda bh, qi, ki: (bh, qi, 0)),
                pl.BlockSpec((1, Dh, tk), lambda bh, qi, ki: (bh, 0, ki)),
                pl.BlockSpec((1, tk, Dh), lambda bh, qi, ki: (bh, ki, 0))]
    operands = [q, kt, v]
    has_mask = mask is not None
    if has_mask:
        H = num_heads
        if mask.shape[0] == 1:
            midx = lambda bh, qi, ki: (0, 0, qi, ki)
        else:
            midx = lambda bh, qi, ki: (bh // H, 0, qi, ki)
        in_specs.append(pl.BlockSpec((1, 1, tq, tk), midx))
        operands.append(mask)

    kernel = functools.partial(_flash_attn_kernel, causal=causal,
                               has_mask=has_mask, tq=tq, tk=tk)
    return pl.pallas_call(
        kernel,
        out_shape=jax.ShapeDtypeStruct((BH, Sq, Dh), jnp.bfloat16),
        grid=grid,
        in_specs=in_specs,
        out_specs=pl.BlockSpec((1, tq, Dh), lambda bh, qi, ki: (bh, qi, 0)),
        scratch_shapes=[pltpu.VMEM((tq, 1), jnp.float32),
                        pltpu.VMEM((tq, 1), jnp.float32),
                        pltpu.VMEM((tq, Dh), jnp.float32)],
        compiler_params=_cp(("parallel", "parallel", "arbitrary")),
    )(*operands)


# ----------------------------- model glue (JAX) ------------------------------

def make_rope(head_dim, max_seq_len):
    inv_freq = 1.0 / (10000.0 ** (jnp.arange(0, head_dim, 2, dtype=jnp.float32) / head_dim))
    pos = jnp.arange(max_seq_len, dtype=jnp.float32)
    sinusoid = jnp.einsum('i,j->ij', pos, inv_freq)     # [max_seq_len, head_dim//2]
    return jnp.cos(sinusoid), jnp.sin(sinusoid)


def apply_rope_halves(x, cos, sin):
    # x: [B, S, H, Dh] whose per-head features are pre-permuted to [evens..., odds...]
    # (baked into Wq/Wk columns), so RoPE is contiguous-halves math; this matches the
    # PyTorch reference torch.cat([x1*c - x2*s, x1*s + x2*c], -1) exactly.
    half = x.shape[-1] // 2
    x1 = x[..., :half].astype(jnp.float32)
    x2 = x[..., half:].astype(jnp.float32)
    c = cos[None, :, None, :]
    s = sin[None, :, None, :]
    return jnp.concatenate([x1 * c - x2 * s, x1 * s + x2 * c], axis=-1)


def _additive_mask(mask):
    if mask is None:
        return None
    # mask: [B,1,Sq,Sk] or [1,1,Sq,Sk]; -1e30 (not -inf) keeps fully masked rows finite.
    m = jnp.where(mask == 0, jnp.float32(-1e30), jnp.float32(0.0))
    return m.reshape(m.shape[0], 1, m.shape[-2], m.shape[-1])


def self_attention_context(p, x2, B, S, H, rope, mask=None, causal=False):
    """Self-attention context [B*S, D] (bf16). Fused QKV matmul + flash attention."""
    D = x2.shape[-1]
    Dh = D // H
    qkv = linear_pallas(x2, p['w_qkv'], p['b_qkv'], out_dtype=jnp.bfloat16)
    q = qkv[:, :D].reshape(B, S, H, Dh)
    k = qkv[:, D:2 * D].reshape(B, S, H, Dh)
    v = qkv[:, 2 * D:3 * D].reshape(B, S, H, Dh)
    if rope is not None:
        cos, sin = rope
        q = apply_rope_halves(q, cos[:S], sin[:S])
        k = apply_rope_halves(k, cos[:S], sin[:S])
    q = q.transpose(0, 2, 1, 3).reshape(B * H, S, Dh).astype(jnp.bfloat16)
    kt = k.transpose(0, 2, 3, 1).reshape(B * H, Dh, S).astype(jnp.bfloat16)
    v = v.transpose(0, 2, 1, 3).reshape(B * H, S, Dh).astype(jnp.bfloat16)
    ctx = attention_pallas(q, kt, v, causal=causal, mask=mask, num_heads=H)
    return ctx.reshape(B, H, S, Dh).transpose(0, 2, 1, 3).reshape(B * S, D)


def cross_attention_context(p, y2, enc2, B, Sq, Sk, H, mask=None):
    """Cross-attention context [B*Sq, D] (bf16); K|V fused matmul over encoder output."""
    D = y2.shape[-1]
    Dh = D // H
    q = linear_pallas(y2, p['w_q'], p['b_q'], out_dtype=jnp.bfloat16)[:, :D]
    kv = linear_pallas(enc2, p['w_kv'], p['b_kv'], out_dtype=jnp.bfloat16)
    k = kv[:, :D].reshape(B, Sk, H, Dh)
    v = kv[:, D:2 * D].reshape(B, Sk, H, Dh)
    q = q.reshape(B, Sq, H, Dh).transpose(0, 2, 1, 3).reshape(B * H, Sq, Dh)
    kt = k.transpose(0, 2, 3, 1).reshape(B * H, Dh, Sk)
    v = v.transpose(0, 2, 1, 3).reshape(B * H, Sk, Dh)
    ctx = attention_pallas(q, kt, v, causal=False, mask=mask, num_heads=H)
    return ctx.reshape(B, H, Sq, Dh).transpose(0, 2, 1, 3).reshape(B * Sq, D)


def midi_input_embedding(p, x):
    # x: [B, S, 4] float (cols 0,3 integer-valued; cols 1,2 continuous)
    B, S, _ = x.shape
    pitch = jnp.take(p['pitch_emb'], x[..., 0].astype(jnp.int32), axis=0)
    velocity = jnp.take(p['vel_emb'], x[..., 3].astype(jnp.int32), axis=0)
    # Linear(1, E) for onset / duration == broadcast FMA (f32, no Pallas launch needed)
    onset = x[..., 1:2].astype(jnp.float32) * p['onset_w'] + p['onset_b']
    duration = x[..., 2:3].astype(jnp.float32) * p['dur_w'] + p['dur_b']
    emb = jnp.concatenate([pitch, onset, duration, velocity], axis=-1)
    return linear_pallas(emb.reshape(B * S, -1), p['proj_w'], p['proj_b']).reshape(B, S, -1)


def midi_decoder_embedding(p, x):
    # x: [B, S, 4] int
    B, S, _ = x.shape
    pitch = jnp.take(p['pitch_emb'], x[..., 0].astype(jnp.int32), axis=0)
    onset = jnp.take(p['onset_emb'], x[..., 1].astype(jnp.int32), axis=0)
    duration = jnp.take(p['dur_emb'], x[..., 2].astype(jnp.int32), axis=0)
    velocity = jnp.take(p['vel_emb'], x[..., 3].astype(jnp.int32), axis=0)
    emb = jnp.concatenate([pitch, onset, duration, velocity], axis=-1)
    return linear_pallas(emb.reshape(B * S, -1), p['proj_w'], p['proj_b']).reshape(B, S, -1)


def midi_transformer_forward(params, p_midi, q_midi,
                             enc_mask=None, dec_mask=None, enc_dec_mask=None):
    cfg = params['config']
    H = cfg['num_heads']
    D = cfg['model_dim']
    rope = params['rope']

    # ---- Encoder ----
    x = midi_input_embedding(params['enc_emb'], p_midi)       # [B, Sp, D]
    B, Sp, _ = x.shape
    x2 = x.reshape(-1, D)
    enc_mask_add = _additive_mask(enc_mask)
    enc_layers = params['encoder']['layers']
    for li, lp in enumerate(enc_layers):
        sa = lp['self_attn']
        ctx = self_attention_context(sa, x2, B, Sp, H, rope, mask=enc_mask_add)
        x2 = proj_res_ln_pallas(ctx, sa['wo'], sa['bo'], x2, lp['ln1_g'], lp['ln1_b'])
        ff = lp['ff']
        last = (li == len(enc_layers) - 1)
        x2 = ffn_res_ln_pallas(
            x2, ff['w1'], ff['b1'], ff['w2'], ff['b2'], lp['ln2_g'], lp['ln2_b'],
            gamma2=params['encoder']['norm_g'] if last else None,
            beta2=params['encoder']['norm_b'] if last else None)
    if not enc_layers:                                         # degenerate config only
        x2 = layernorm_pallas(x2, params['encoder']['norm_g'], params['encoder']['norm_b'])
    enc_out2 = x2                                              # [B*Sp, D], final LN fused

    # ---- Decoder ----
    y = midi_decoder_embedding(params['dec_emb'], q_midi)      # [B, Sq, D]
    Sq = y.shape[1]
    y2 = y.reshape(-1, D)
    causal = isinstance(dec_mask, str) and dec_mask == "causal"
    dec_mask_add = None if causal else _additive_mask(dec_mask)
    xd_mask_add = _additive_mask(enc_dec_mask)
    for lp in params['decoder']['layers']:
        sa = lp['self_attn']
        ctx = self_attention_context(sa, y2, B, Sq, H, rope,
                                     mask=dec_mask_add, causal=causal)
        y2 = proj_res_ln_pallas(ctx, sa['wo'], sa['bo'], y2, lp['ln1_g'], lp['ln1_b'])
        ca = lp['cross_attn']
        ctx = cross_attention_context(ca, y2, enc_out2, B, Sq, Sp, H, mask=xd_mask_add)
        y2 = proj_res_ln_pallas(ctx, ca['wo'], ca['bo'], y2, lp['ln2_g'], lp['ln2_b'])
        ff = lp['ff']
        y2 = ffn_res_ln_pallas(y2, ff['w1'], ff['b1'], ff['w2'], ff['b2'],
                               lp['ln3_g'], lp['ln3_b'])

    # ---- Output heads: decoder final LN fused as prologue of one [D, sum(V)] matmul ----
    logits = ln_linear_pallas(y2, params['decoder']['norm_g'], params['decoder']['norm_b'],
                              params['heads']['w'], params['heads']['b'])
    out = {}
    off = 0
    for name, sz in zip(params['heads']['names'], params['heads']['sizes']):
        out[name] = logits[:, off:off + sz].reshape(B, Sq, sz)
        off += sz
    return out


# ----------------------------- parameters ------------------------------------

def init_linear(key, d_in, d_out):
    kw, kb = jax.random.split(key)
    bound = 1.0 / math.sqrt(d_in)
    w = jax.random.uniform(kw, (d_in, d_out), jnp.float32, -bound, bound)
    b = jax.random.uniform(kb, (d_out,), jnp.float32, -bound, bound)
    return w, b


def init_embedding(key, vocab, dim):
    return jax.random.normal(key, (vocab, dim), jnp.float32)


def _pad_fused(w, b, mult=128):
    """Zero-pad fused projection width to a multiple of 128 lanes (unmasked stores)."""
    n = w.shape[1]
    npad = (-n) % mult
    if npad:
        w = jnp.pad(w, ((0, 0), (0, npad)))
        b = jnp.pad(b, ((0, npad),))
    return w, b


def build_params(key, cfg):
    D, E, F = cfg['model_dim'], cfg['embed_dim'], cfg['ff_dim']
    H = cfg['num_heads']
    Dh = D // H
    scale = 1.0 / math.sqrt(Dh)
    keys = iter(jax.random.split(key, 256))
    nk = lambda: next(keys)

    # Per-head [even..., odd...] column permutation baked into Wq / Wk so runtime
    # RoPE is contiguous-halves (no stride-2 lane gathers).
    rope_perm = jnp.concatenate([
        jnp.concatenate([jnp.arange(h * Dh, (h + 1) * Dh, 2),
                         jnp.arange(h * Dh + 1, (h + 1) * Dh, 2)])
        for h in range(H)])

    def mha_self_params(rotary=True):
        wq, bq = init_linear(nk(), D, D)
        wk, bk = init_linear(nk(), D, D)
        wv, bv = init_linear(nk(), D, D)
        wo, bo = init_linear(nk(), D, D)
        wq, bq = wq * scale, bq * scale            # bake 1/sqrt(Dh) into Q projection
        if rotary:
            wq, bq = wq[:, rope_perm], bq[rope_perm]
            wk, bk = wk[:, rope_perm], bk[rope_perm]
        w_qkv = jnp.concatenate([wq, wk, wv], axis=1)
        b_qkv = jnp.concatenate([bq, bk, bv])
        w_qkv, b_qkv = _pad_fused(w_qkv, b_qkv)
        return dict(w_qkv=w_qkv.astype(jnp.bfloat16), b_qkv=b_qkv,
                    wo=wo.astype(jnp.bfloat16), bo=bo)

    def mha_cross_params():
        wq, bq = init_linear(nk(), D, D)
        wk, bk = init_linear(nk(), D, D)
        wv, bv = init_linear(nk(), D, D)
        wo, bo = init_linear(nk(), D, D)
        wq, bq = wq * scale, bq * scale
        w_q, b_q = _pad_fused(wq, bq)
        w_kv, b_kv = _pad_fused(jnp.concatenate([wk, wv], axis=1),
                                jnp.concatenate([bk, bv]))
        return dict(w_q=w_q.astype(jnp.bfloat16), b_q=b_q,
                    w_kv=w_kv.astype(jnp.bfloat16), b_kv=b_kv,
                    wo=wo.astype(jnp.bfloat16), bo=bo)

    def ff_params():
        w1, b1 = init_linear(nk(), D, F)
        w2, b2 = init_linear(nk(), F, D)
        return dict(w1=w1.astype(jnp.bfloat16), b1=b1,
                    w2=w2.astype(jnp.bfloat16), b2=b2)

    def ln_params():
        return jnp.ones((D,), jnp.float32), jnp.zeros((D,), jnp.float32)

    enc_layers = []
    for _ in range(cfg['num_encoder_layers']):
        g1, b1 = ln_params(); g2, b2 = ln_params()
        enc_layers.append(dict(self_attn=mha_self_params(rotary=True), ln1_g=g1, ln1_b=b1,
                               ff=ff_params(), ln2_g=g2, ln2_b=b2))
    ng, nb = ln_params()
    encoder = dict(layers=enc_layers, norm_g=ng, norm_b=nb)

    dec_layers = []
    for _ in range(cfg['num_decoder_layers']):
        g1, b1 = ln_params(); g2, b2 = ln_params(); g3, b3 = ln_params()
        dec_layers.append(dict(self_attn=mha_self_params(rotary=True), ln1_g=g1, ln1_b=b1,
                               cross_attn=mha_cross_params(), ln2_g=g2, ln2_b=b2,
                               ff=ff_params(), ln3_g=g3, ln3_b=b3))
    ng2, nb2 = ln_params()
    decoder = dict(layers=dec_layers, norm_g=ng2, norm_b=nb2)

    # Encoder-side embedding: onset / duration Linear(1, E) kept as f32 vectors (FMA glue).
    onset_w, onset_b = init_linear(nk(), 1, E)
    dur_w, dur_b = init_linear(nk(), 1, E)
    pw, pb = init_linear(nk(), 4 * E, D)
    enc_emb = dict(pitch_emb=init_embedding(nk(), cfg['pitch_vocab_in'], E),
                   vel_emb=init_embedding(nk(), cfg['velocity_vocab_in'], E),
                   onset_w=onset_w[0], onset_b=onset_b,
                   dur_w=dur_w[0], dur_b=dur_b,
                   proj_w=pw.astype(jnp.bfloat16), proj_b=pb)

    pw2, pb2 = init_linear(nk(), 4 * E, D)
    dec_emb = dict(pitch_emb=init_embedding(nk(), cfg['pitch_vocab_out'], E),
                   onset_emb=init_embedding(nk(), cfg['onset_vocab_out'], E),
                   dur_emb=init_embedding(nk(), cfg['duration_vocab_out'], E),
                   vel_emb=init_embedding(nk(), cfg['velocity_vocab_out'], E),
                   proj_w=pw2.astype(jnp.bfloat16), proj_b=pb2)

    # Output heads fused into one [D, sum(vocab)] matmul, padded to 128-lane multiples.
    names = ('pitch', 'onset', 'duration', 'velocity')
    sizes = (cfg['pitch_vocab_out'], cfg['onset_vocab_out'],
             cfg['duration_vocab_out'], cfg['velocity_vocab_out'])
    hws, hbs = [], []
    for sz in sizes:
        w, b = init_linear(nk(), D, sz)
        hws.append(w); hbs.append(b)
    hw, hb = _pad_fused(jnp.concatenate(hws, axis=1), jnp.concatenate(hbs))
    heads = dict(w=hw.astype(jnp.bfloat16), b=hb, names=names, sizes=sizes)

    rope = make_rope(Dh, cfg['max_seq_len'])

    return dict(config=cfg, rope=rope, enc_emb=enc_emb, dec_emb=dec_emb,
                encoder=encoder, decoder=decoder, heads=heads)


# ----------------------------- main -------------------------------------------

if __name__ == "__main__":
    cfg = dict(pitch_vocab_in=16, velocity_vocab_in=16,
               pitch_vocab_out=16, onset_vocab_out=16,
               duration_vocab_out=16, velocity_vocab_out=16,
               embed_dim=8, model_dim=32, num_heads=2, ff_dim=64,
               num_encoder_layers=2, num_decoder_layers=2, max_seq_len=32)

    key = jax.random.PRNGKey(0)
    pkey, ikey = jax.random.split(key)
    params = build_params(pkey, cfg)

    B, Sp, Sq = 2, 8, 8
    k1, k2, k3, k4, k5 = jax.random.split(ikey, 5)
    pitch_in = jax.random.randint(k1, (B, Sp), 0, cfg['pitch_vocab_in'])
    vel_in = jax.random.randint(k2, (B, Sp), 0, cfg['velocity_vocab_in'])
    onset = jax.random.uniform(k3, (B, Sp), jnp.float32)
    dur = jax.random.uniform(k4, (B, Sp), jnp.float32)
    # p_midi: [B, Sp, 4] = (pitch [int-valued], onset [cont], duration [cont], velocity [int-valued])
    p_midi = jnp.stack([pitch_in.astype(jnp.float32), onset, dur,
                        vel_in.astype(jnp.float32)], axis=-1)
    # q_midi: [B, Sq, 4] all discrete
    q_midi = jax.random.randint(k5, (B, Sq, 4), 0, 16)

    # Preferred path: causal decoder self-attention mask generated in-kernel (iota).
    out = midi_transformer_forward(params, p_midi, q_midi,
                                   enc_mask=None, dec_mask="causal", enc_dec_mask=None)
    out = jax.tree_util.tree_map(jax.block_until_ready, out)

    # Cross-check: explicit tril mask tensor (reference semantics) must match.
    tril = jnp.tril(jnp.ones((Sq, Sq), jnp.float32))[None, None]
    out_m = midi_transformer_forward(params, p_midi, q_midi,
                                     enc_mask=None, dec_mask=tril, enc_dec_mask=None)
    out_m = jax.tree_util.tree_map(jax.block_until_ready, out_m)

    for name in ('pitch', 'onset', 'duration', 'velocity'):
        assert out[name].shape == (B, Sq, cfg[name + '_vocab_out'])
        assert bool(jnp.isfinite(out[name]).all())
        assert bool(jnp.allclose(out[name], out_m[name], atol=1e-3, rtol=1e-3))
    print("KERNEL_OK")
</pallas_src>

<mosaic_0001>
module attributes {stable_mosaic.version = 11 : i64} {
  func.func @_probe_copy_kernel(%arg0: i32, %arg1: memref<8x128xf32, #tpu.memory_space<vmem>>, %arg2: memref<8x128xf32, #tpu.memory_space<vmem>>) attributes {dimension_semantics = [#tpu.dimension_semantics<arbitrary>], iteration_bounds = array<i64: 1>, scalar_prefetch = 0 : i64, scratch_operands = 0 : i64, tpu.core_type = #tpu.core_type<tc>, window_params = [{pipeline_mode = #tpu.pipeline_mode<synchronous>, transform_indices = @transform_0, window_bounds = array<i64: 8, 128>}, {pipeline_mode = #tpu.pipeline_mode<synchronous>, transform_indices = @transform_1, window_bounds = array<i64: 8, 128>}]} {
    %c0 = arith.constant 0 : index
    %c0_0 = arith.constant 0 : index
    %0 = vector.load %arg1[%c0, %c0_0] : memref<8x128xf32, #tpu.memory_space<vmem>>, vector<8x128xf32>
    %c0_1 = arith.constant 0 : index
    %c0_2 = arith.constant 0 : index
    %1 = vector.load %arg2[%c0_1, %c0_2] : memref<8x128xf32, #tpu.memory_space<vmem>>, vector<8x128xf32>
    tpu.vector_store %arg2[%c0_1, %c0_2], %0 {strides = array<i32>} : memref<8x128xf32, #tpu.memory_space<vmem>>, vector<8x128xf32>,
    return
  }
  func.func @transform_0(%arg0: i32) -> (i32, i32) {
    %c0_i32 = arith.constant 0 : i32
    %c0_i32_0 = arith.constant 0 : i32
    %c0_i32_1 = arith.constant 0 : i32
    return %c0_i32, %c0_i32_0 : i32, i32
  }
  func.func @transform_1(%arg0: i32) -> (i32, i32) {
    %c0_i32 = arith.constant 0 : i32
    %c0_i32_0 = arith.constant 0 : i32
    %c0_i32_1 = arith.constant 0 : i32
    return %c0_i32, %c0_i32_0 : i32, i32
  }
}

module attributes {stable_mosaic.version = 11 : i64} {
  func.func @_linear_kernel(%arg0: i32, %arg1: memref<16x32xf32, #tpu.memory_space<vmem>>, %arg2: memref<32x32xbf16, #tpu.memory_space<vmem>>, %arg3: memref<1x32xf32, #tpu.memory_space<vmem>>, %arg4: memref<16x32xf32, #tpu.memory_space<vmem>>) attributes {dimension_semantics = [#tpu.dimension_semantics<parallel>], iteration_bounds = array<i64: 1>, scalar_prefetch = 0 : i64, scratch_operands = 0 : i64, tpu.core_type = #tpu.core_type<tc>, window_params = [{transform_indices = @transform_0, window_bounds = array<i64: 16, 32>}, {pipeline_mode = #tpu.pipeline_mode<synchronous>, transform_indices = @transform_1, window_bounds = array<i64: 32, 32>}, {pipeline_mode = #tpu.pipeline_mode<synchronous>, transform_indices = @transform_2, window_bounds = array<i64: 1, 32>}, {transform_indices = @transform_3, window_bounds = array<i64: 16, 32>}]} {
    %c0 = arith.constant 0 : index
    %c0_0 = arith.constant 0 : index
    %0 = vector.load %arg1[%c0, %c0_0] : memref<16x32xf32, #tpu.memory_space<vmem>>, vector<16x32xf32>
    %1 = arith.truncf %0 : vector<16x32xf32> to vector<16x32xbf16>
    %c0_1 = arith.constant 0 : index
    %c0_2 = arith.constant 0 : index
    %2 = vector.load %arg2[%c0_1, %c0_2] : memref<32x32xbf16, #tpu.memory_space<vmem>>, vector<32x32xbf16>
    %cst = arith.constant dense<0.000000e+00> : vector<16x32xf32>
    %3 = tpu.matmul %1, %2, %cst {dimension_numbers = #tpu.dot_dimension_numbers<[1], [0], [0], [1], [0, 0, 1, 1], [], []>} : vector<16x32xbf16>, vector<32x32xbf16>, vector<16x32xf32> -> vector<16x32xf32>
    %c0_3 = arith.constant 0 : index
    %c0_4 = arith.constant 0 : index
    %4 = vector.load %arg3[%c0_3, %c0_4] : memref<1x32xf32, #tpu.memory_space<vmem>>, vector<1x32xf32>
    %5 = vector.broadcast %4 : vector<1x32xf32> to vector<16x32xf32>
    %6 = arith.addf %3, %5 : vector<16x32xf32>
    %c0_5 = arith.constant 0 : index
    %c0_6 = arith.constant 0 : index
    %7 = vector.load %arg4[%c0_5, %c0_6] : memref<16x32xf32, #tpu.memory_space<vmem>>, vector<16x32xf32>
    tpu.vector_store %arg4[%c0_5, %c0_6], %6 {strides = array<i32>} : memref<16x32xf32, #tpu.memory_space<vmem>>, vector<16x32xf32>,
    return
  }
  func.func @transform_0(%arg0: i32) -> (i32, i32) {
    %c0_i32 = arith.constant 0 : i32
    %c0_i32_0 = arith.constant 0 : i32
    return %arg0, %c0_i32 : i32, i32
  }
  func.func @transform_1(%arg0: i32) -> (i32, i32) {
    %c0_i32 = arith.constant 0 : i32
    %c0_i32_0 = arith.constant 0 : i32
    %c0_i32_1 = arith.constant 0 : i32
    return %c0_i32, %c0_i32_0 : i32, i32
  }
  func.func @transform_2(%arg0: i32) -> (i32, i32) {
    %c0_i32 = arith.constant 0 : i32
    %c0_i32_0 = arith.constant 0 : i32
    %c0_i32_1 = arith.constant 0 : i32
    return %c0_i32, %c0_i32_0 : i32, i32
  }
  func.func @transform_3(%arg0: i32) -> (i32, i32) {
    %c0_i32 = arith.constant 0 : i32
    %c0_i32_0 = arith.constant 0 : i32
    return %arg0, %c0_i32 : i32, i32
  }
}

</mosaic_0001>

<bundles_post_ra>
// kernel: tpu_custom_call.1
= control target key start
LH: loop header
LB: loop body
LE: loop exit
PB: predicated region body
PF: predicated region fallthrough
CT: control target
= control target key end

     0   :  { %6 = vsyncpa [#allocation3], 0  ;;  %s102_s0 = inlined_call_operand.hbm [shape: f32[8,128], index: 0, kind: input, shape index: {}]   ;;  %s103_s1 = inlined_call_operand.hbm [shape: f32[8,128], index: 1, kind: output, shape index: {}]  }
   0x1   :  { %7 = vsyncpa [#allocation4], 0  ;;  %s84_s6 = smov [#allocation2]  }
   0x2   :  { %s14_s7 = sshll.u32 %s84_s6, 4  ;;  %s15_s7 = int_to_ptr.vmem [resolvable:$true] %s14_s7 }
   0x3   :  { %s48_s8 = scalar_lea.vmem %s15_s7, 128  ;;  %p53_p1 = scmp.lt.s32.totalorder %s15_s7, %s15_s7 }
   0x4   :  { %p49_p0 = scmp.ne.s32.totalorder %s15_s7, %s48_s8  ;;  %p54_p2 = scmp.lt.s32.totalorder %s48_s8, %s48_s8 }
   0x6   :  { %p55_p3 = por %p54_p2, %p53_p1 }
   0x8   :  { %p56_p4 = pnand %p55_p3, %p49_p0 }
   0xa   :  { %59 = shalt.err (!%p56_p4)
}
   0xb   :  { %17 = dma.hbm_to_vmem [thread:$0]  %s102_s0, 128, %s15_s7, [#allocation3]  }
   0xc   :  { %80 = dma.done.wait [#allocation3], 128  }
   0xd   :  { %81 = vsyncadd [#allocation3], 4294967168  ;;  %s85_s11 = smov [#allocation5]   ;;  %v21_v0 = vld [vmem:[#allocation2] sm:$0xff] }
   0xe   :  { %s29_s12 = sshll.u32 %s85_s11, 4  ;;  %22 = vst [vmem:[#allocation5] sm:$0xff] %v21_v0  ;;  %s30_s12 = int_to_ptr.vmem [resolvable:$true] %s29_s12 }
   0xf   :  { %s60_s13 = scalar_lea.vmem %s30_s12, 128  ;;  %p65_p6 = scmp.lt.s32.totalorder %s30_s12, %s30_s12 }
  0x10   :  { %p61_p5 = scmp.ne.s32.totalorder %s30_s12, %s60_s13  ;;  %p66_p7 = scmp.lt.s32.totalorder %s60_s13, %s60_s13 }
  0x12   :  { %p67_p8 = por %p66_p7, %p65_p6 }
  0x14   :  { %p68_p9 = pnand %p67_p8, %p61_p5 }
  0x16   :  { %71 = shalt.err (!%p68_p9)
}
  0x17   :  { %32 = dma.vmem_to_hbm [thread:$0]  %s30_s12, 128, %s103_s1, [#allocation4]  }
  0x18   :  { %82 = dma.done.wait [#allocation4], 128  }
  0x19   :  { %83 = vsyncadd [#allocation4], 4294967168 }
  0x1a   :  { %36 = vsyncpa [#allocation3], 1 }
  0x1b   :  { %37 = vsyncpa [#allocation4], 1 }

// kernel: tpu_custom_call.1
= control target key start
LH: loop header
LB: loop body
LE: loop exit
PB: predicated region body
PF: predicated region fallthrough
CT: control target
= control target key end

     0   :  { %8 = vsyncpa [#allocation3], 0  ;;  %s274_s0 = inlined_call_operand.hbm [shape: f32[16,32], index: 0, kind: input, shape index: {}]   ;;  %s275_s1 = inlined_call_operand.hbm [shape: bf16[32,32], index: 1, kind: input, shape index: {}]   ;;  %s276_s2 = inlined_call_operand.vmem [shape: f32[1,32], index: 2, kind: input, shape index: {}]   ;;  %s277_s3 = inlined_call_operand.hbm [shape: f32[16,32], index: 3, kind: output, shape index: {}]  }
   0x1   :  { %9 = vsyncpa [#allocation6], 0 }
   0x2   :  { %10 = vsyncpa [#allocation4], 0  ;;  %s227_s12 = smov [#allocation2]  }
   0x3   :  { %s16_s13 = sshll.u32 %s227_s12, 4  ;;  %s17_s13 = int_to_ptr.vmem [resolvable:$true] %s16_s13 }
   0x4   :  { %s169_s14 = scalar_lea.vmem %s17_s13, 256  ;;  %p174_p1 = scmp.lt.s32.totalorder %s17_s13, %s17_s13 }
   0x5   :  { %p170_p0 = scmp.ne.s32.totalorder %s17_s13, %s169_s14  ;;  %p175_p2 = scmp.lt.s32.totalorder %s169_s14, %s169_s14 }
   0x7   :  { %p176_p3 = por %p175_p2, %p174_p1 }
   0x9   :  { %p177_p4 = pnand %p176_p3, %p170_p0 }
   0xb   :  { %180 = shalt.err (!%p177_p4)
}
   0xc   :  { %s228_s15 = smov 128   ;;  %s229_s16 = smov 8  }
   0xd   :  { %22 = dma.hbm_to_vmem [thread:$0]  %s274_s0, 256, %s17_s13, [#allocation3], %s228_s15, %s228_s15, %s229_s16  }
   0xe   :  { %s230_s19 = smov [#allocation5]  }
   0xf   :  { %s28_s20 = sshll.u32 %s230_s19, 4  ;;  %s29_s20 = int_to_ptr.vmem [resolvable:$true] %s28_s20 }
  0x10   :  { %s189_s21 = scalar_lea.vmem %s29_s20, 256  ;;  %p194_p6 = scmp.lt.s32.totalorder %s29_s20, %s29_s20 }
  0x11   :  { %p190_p5 = scmp.ne.s32.totalorder %s29_s20, %s189_s21  ;;  %p195_p7 = scmp.lt.s32.totalorder %s189_s21, %s189_s21 }
  0x13   :  { %p196_p8 = por %p195_p7, %p194_p6 }
  0x15   :  { %p197_p9 = pnand %p196_p8, %p190_p5 }
  0x17   :  { %200 = shalt.err (!%p197_p9)
}
  0x18   :  { %s231_s22 = smov 64   ;;  %s232_s23 = smov 4  }
  0x19   :  { %34 = dma.hbm_to_vmem [thread:$0]  %s275_s1, 256, %s29_s20, [#allocation6], %s231_s22, %s231_s22, %s232_s23  }
  0x1a   :  { %221 = dma.done.wait [#allocation3], 256  }
  0x1b   :  { %222 = vsyncadd [#allocation3], 4294967040 }
  0x1c   :  { %223 = dma.done.wait [#allocation6], 256  }
  0x1d   :  { %224 = vsyncadd [#allocation6], 4294967040  ;;  %v233_v0 = vmov 0.0   ;;  %vm234_vm0 = vmmov 0   ;;  %v159_v1 = vld [vmem:[#allocation5 + $0x8] sm:$0xff]   ;;  %v160_v2 = vld [vmem:[#allocation5] sm:$0xff]  }
  0x1e   :  { %142 = vmatprep.subr.bf16.mxu0 %v233_v0  ;;  %146 = vmatprep.mubr.msk.bf16.mxu0 %vm234_vm0, %v233_v0  ;;  %v44_v3 = vld [vmem:[#allocation2] sm:$0xff]  ;;  %v45_v4 = vld [vmem:[#allocation2 + $0x8] sm:$0xff]  ;;  %vm70_vm1 = vcmask 261120   ;;  %s235_s26 = smov [#allocation7]  }
  0x1f   :  { %143 = vmatpush3.bf16.msra.mxu0 %v159_v1  ;;  %v46_v5 = vpack.c.bf16 %v45_v4, %v44_v3  ;;  %v135_v6 = vld [vmem:[%s276_s2] ss:$0 sm:$0xff]  ;;  %s122_s27 = sshll.u32 %s235_s26, 4  ;;  %s123_s27 = int_to_ptr.vmem [resolvable:$true] %s122_s27 }
  0x20   :  { %144 = vmatprep.subr.bf16.mxu0 %v233_v0  ;;  %s201_s28 = scalar_lea.vmem %s123_s27, 256  ;;  %p206_p11 = scmp.lt.s32.totalorder %s123_s27, %s123_s27 }
  0x21   :  { %p202_p10 = scmp.ne.s32.totalorder %s123_s27, %s201_s28  ;;  %p207_p12 = scmp.lt.s32.totalorder %s201_s28, %s201_s28 }
  0x23   :  { %145 = vmatpush3.bf16.msra.mxu0 %v160_v2  ;;  %p208_p13 = por %p207_p12, %p206_p11 }
  0x25   :  { %p209_p0 = pnand %p208_p13, %p202_p10 }
  0x26   :  { %147 = vmatmul.mubr.msk.bf16.vlgmr.msra.gmra.mxu0 %vm70_vm1, %v46_v5 }
  0xe6   :  { %v108_v7 = vpop.f32.mrf.mxu0 }
  0xe7   :  { %v109_v8 = vadd.f32 %v135_v6, %v108_v7 }
  0xe8   :  { %v148_v9 = vpop.f32.mrf.mxu0 }
  0xe9   :  { %115 = vst.msk [vmem:[#allocation7] sm:$0xff] %vm70_vm1, %v109_v8 }
  0xea   :  { %v111_v10 = vpop.f32.mrf.mxu0 }
  0xeb   :  { %v112_v11 = vadd.f32 %v135_v6, %v111_v10 }
  0xec   :  { %v149_v12 = vpop.f32.mrf.mxu0 }
  0xed   :  { %116 = vst.msk [vmem:[#allocation7 + $0x8] sm:$0xff] %vm70_vm1, %v112_v11 }
  0xee   :  { %212 = shalt.err (!%p209_p0)
}
  0xef   :  { %128 = dma.vmem_to_hbm [thread:$0]  %s123_s27, 256, %s277_s3, [#allocation4], %s228_s15, %s228_s15, %s229_s16  }
  0xf0   :  { %225 = dma.done.wait [#allocation4], 256  }
  0xf1   :  { %226 = vsyncadd [#allocation4], 4294967040 }
  0xf2   :  { %132 = vsyncpa [#allocation3], 1 }
  0xf3   :  { %133 = vsyncpa [#allocation6], 1 }
  0xf4   :  { %134 = vsyncpa [#allocation4], 1 }

</bundles_post_ra>
